<compile_context>
chip_gen: v7x
topology: tpu7x:2x2x1
jax: 0.10.0
libtpu: 0.0.40
codegen_flags: <defaults>
</compile_context>

<pallas_src>
import functools

import jax
import jax.numpy as jnp
from jax.experimental import pallas as pl
from jax.experimental.pallas import tpu as pltpu

_H1, _H2, _H3 = 64, 128, 64   # hidden sizes from the PyTorch module
_OUT_PAD = 128                # lane-dense output slab width (>= _H3, multiple of 128)


def _mlp_kernel(x_ref, w1_ref, b1_ref, w2_ref, b2_ref, w3_ref, b3_ref, o_ref):
    # Layer 1: (TM, n_in)bf16 @ (n_in, 64)bf16 -> f32 acc, bias + ReLU in f32.
    h1 = jnp.dot(x_ref[...], w1_ref[...], preferred_element_type=jnp.float32)
    h1 = jnp.maximum(h1 + b1_ref[...], 0.0)
    # Layer 2: cast activations back to bf16 only for the MXU operand.
    h2 = jnp.dot(h1.astype(jnp.bfloat16), w2_ref[...],
                 preferred_element_type=jnp.float32)
    h2 = jnp.maximum(h2 + b2_ref[...], 0.0)
    # Layer 3: output features zero-padded to 128 lanes -> unmasked lane-dense store.
    h3 = jnp.dot(h2.astype(jnp.bfloat16), w3_ref[...],
                 preferred_element_type=jnp.float32)
    o_ref[...] = jnp.maximum(h3 + b3_ref[...], 0.0).astype(o_ref.dtype)


@functools.partial(jax.jit, static_argnames=("block_m",))
def actor_critic_forward(x, params, *, block_m=128):
    """Pallas implementation of ActorCritic.forward (the shared ReLU trunk).

    x: (B, n_inputs) float32
    params: dict with w1 (n_in,64), b1 (64,), w2 (64,128), b2 (128,),
            w3 (128,64), b3 (64,)   (actor/critic head params unused by forward)
    returns: (B, 64) float32
    """
    B, n_in = x.shape

    # Pick a batch tile: multiple of 8 sublanes, capped at block_m; pad B so the
    # grid divides evenly (padded rows are computed and discarded).
    tm = min(block_m, ((B + 7) // 8) * 8)
    Bp = ((B + tm - 1) // tm) * tm
    if Bp != B:
        x = jnp.pad(x, ((0, Bp - B), (0, 0)))
    grid_m = pl.cdiv(Bp, tm)

    # bf16 operands for the MXU; biases stay f32 (added to the f32 accumulator).
    xb = x.astype(jnp.bfloat16)
    w1 = params["w1"].astype(jnp.bfloat16)
    w2 = params["w2"].astype(jnp.bfloat16)
    w3 = jnp.pad(params["w3"], ((0, 0), (0, _OUT_PAD - _H3))).astype(jnp.bfloat16)
    b1 = params["b1"].reshape(1, -1).astype(jnp.float32)
    b2 = params["b2"].reshape(1, -1).astype(jnp.float32)
    b3 = jnp.pad(params["b3"], (0, _OUT_PAD - _H3)).reshape(1, -1).astype(jnp.float32)

    x_spec = pl.BlockSpec((tm, n_in), lambda i: (i, 0))
    out_spec = pl.BlockSpec((tm, _OUT_PAD), lambda i: (i, 0))
    # Weights/biases: constant index_map -> stay resident in VMEM across grid steps.
    const = lambda shape: pl.BlockSpec(shape, lambda i: (0, 0))

    flops = 2 * Bp * (n_in * _H1 + _H1 * _H2 + _H2 * _OUT_PAD)
    bytes_accessed = (
        xb.size * 2 + w1.size * 2 + w2.size * 2 + w3.size * 2
        + (b1.size + b2.size + b3.size) * 4 + Bp * _OUT_PAD * 4)

    out = pl.pallas_call(
        _mlp_kernel,
        out_shape=jax.ShapeDtypeStruct((Bp, _OUT_PAD), jnp.float32),
        grid=(grid_m,),
        in_specs=[
            x_spec,
            const((n_in, _H1)), const((1, _H1)),
            const((_H1, _H2)), const((1, _H2)),
            const((_H2, _OUT_PAD)), const((1, _OUT_PAD)),
        ],
        out_specs=out_spec,
        compiler_params=pltpu.CompilerParams(
            dimension_semantics=("parallel",),      # v7x: shard batch tiles on 2 TCs
            vmem_limit_bytes=32 * 1024 * 1024,      # safe on v7x's smaller VMEM
        ),
        cost_estimate=pl.CostEstimate(
            flops=flops, transcendentals=0, bytes_accessed=bytes_accessed),
    )(xb, w1, b1, w2, b2, w3, b3)

    # Drop batch padding and the lane padding of the final layer.
    return out[:B, :_H3]


def init_params(key, n_inputs, n_actions):
    """Deterministic init mimicking PyTorch nn.Linear default (U[-1/sqrt(fan_in), +])."""
    keys = jax.random.split(key, 10)

    def linear(kw, kb, fan_in, fan_out):
        bound = 1.0 / jnp.sqrt(fan_in)
        w = jax.random.uniform(kw, (fan_in, fan_out), jnp.float32, -bound, bound)
        b = jax.random.uniform(kb, (fan_out,), jnp.float32, -bound, bound)
        return w, b

    w1, b1 = linear(keys[0], keys[1], n_inputs, _H1)
    w2, b2 = linear(keys[2], keys[3], _H1, _H2)
    w3, b3 = linear(keys[4], keys[5], _H2, _H3)
    # Actor/critic head params exist in __init__ but are not used by forward().
    # TODO(synk): fuse actor softmax-logits + critic value as a 4th layer for evaluate().
    wa, ba = linear(keys[6], keys[7], _H3, n_actions)
    wc, bc = linear(keys[8], keys[9], _H3, 1)
    return {"w1": w1, "b1": b1, "w2": w2, "b2": b2, "w3": w3, "b3": b3,
            "wa": wa, "ba": ba, "wc": wc, "bc": bc}


def _reference_forward_bf16(x, p):
    """JAX reference with the same bf16-operand / f32-accumulate recipe."""
    bf = jnp.bfloat16
    h = jnp.dot(x.astype(bf), p["w1"].astype(bf), preferred_element_type=jnp.float32)
    h = jnp.maximum(h + p["b1"], 0.0)
    h = jnp.dot(h.astype(bf), p["w2"].astype(bf), preferred_element_type=jnp.float32)
    h = jnp.maximum(h + p["b2"], 0.0)
    h = jnp.dot(h.astype(bf), p["w3"].astype(bf), preferred_element_type=jnp.float32)
    return jnp.maximum(h + p["b3"], 0.0)


if __name__ == "__main__":
    B, N_INPUTS, N_ACTIONS = 256, 32, 4   # batch tiled as 2 x 128-row grid steps
    key = jax.random.PRNGKey(0)
    kx, kp = jax.random.split(key)
    x = jax.random.normal(kx, (B, N_INPUTS), jnp.float32)
    params = init_params(kp, N_INPUTS, N_ACTIONS)

    out = actor_critic_forward(x, params)
    out = jax.block_until_ready(out)

    ref = _reference_forward_bf16(x, params)
    assert out.shape == (B, _H3), out.shape
    assert jnp.allclose(out, ref, atol=2e-2, rtol=2e-2), "mismatch vs JAX reference"
    print("KERNEL_OK")
</pallas_src>

<mosaic_0001>
module attributes {stable_mosaic.version = 11 : i64} {
  func.func @_mlp_kernel(%arg0: i32, %arg1: memref<128x32xbf16, #tpu.memory_space<vmem>>, %arg2: memref<32x64xbf16, #tpu.memory_space<vmem>>, %arg3: memref<1x64xf32, #tpu.memory_space<vmem>>, %arg4: memref<64x128xbf16, #tpu.memory_space<vmem>>, %arg5: memref<1x128xf32, #tpu.memory_space<vmem>>, %arg6: memref<128x128xbf16, #tpu.memory_space<vmem>>, %arg7: memref<1x128xf32, #tpu.memory_space<vmem>>, %arg8: memref<128x128xf32, #tpu.memory_space<vmem>>) attributes {dimension_semantics = [#tpu.dimension_semantics<parallel>], iteration_bounds = array<i64: 2>, scalar_prefetch = 0 : i64, scratch_operands = 0 : i64, tpu.core_type = #tpu.core_type<tc>, window_params = [{transform_indices = @transform_0, window_bounds = array<i64: 128, 32>}, {pipeline_mode = #tpu.pipeline_mode<synchronous>, transform_indices = @transform_1, window_bounds = array<i64: 32, 64>}, {pipeline_mode = #tpu.pipeline_mode<synchronous>, transform_indices = @transform_2, window_bounds = array<i64: 1, 64>}, {pipeline_mode = #tpu.pipeline_mode<synchronous>, transform_indices = @transform_3, window_bounds = array<i64: 64, 128>}, {pipeline_mode = #tpu.pipeline_mode<synchronous>, transform_indices = @transform_4, window_bounds = array<i64: 1, 128>}, {pipeline_mode = #tpu.pipeline_mode<synchronous>, transform_indices = @transform_5, window_bounds = array<i64: 128, 128>}, {pipeline_mode = #tpu.pipeline_mode<synchronous>, transform_indices = @transform_6, window_bounds = array<i64: 1, 128>}, {transform_indices = @transform_7, window_bounds = array<i64: 128, 128>}]} {
    %c0 = arith.constant 0 : index
    %c0_0 = arith.constant 0 : index
    %0 = vector.load %arg1[%c0, %c0_0] : memref<128x32xbf16, #tpu.memory_space<vmem>>, vector<128x32xbf16>
    %c0_1 = arith.constant 0 : index
    %c0_2 = arith.constant 0 : index
    %1 = vector.load %arg2[%c0_1, %c0_2] : memref<32x64xbf16, #tpu.memory_space<vmem>>, vector<32x64xbf16>
    %cst = arith.constant dense<0.000000e+00> : vector<128x64xf32>
    %2 = tpu.matmul %0, %1, %cst {dimension_numbers = #tpu.dot_dimension_numbers<[1], [0], [0], [1], [0, 0, 1, 1], [], []>} : vector<128x32xbf16>, vector<32x64xbf16>, vector<128x64xf32> -> vector<128x64xf32>
    %c0_3 = arith.constant 0 : index
    %c0_4 = arith.constant 0 : index
    %3 = vector.load %arg3[%c0_3, %c0_4] : memref<1x64xf32, #tpu.memory_space<vmem>>, vector<1x64xf32>
    %4 = vector.broadcast %3 : vector<1x64xf32> to vector<128x64xf32>
    %5 = arith.addf %2, %4 : vector<128x64xf32>
    %cst_5 = arith.constant 0.000000e+00 : f32
    %6 = vector.broadcast %cst_5 : f32 to vector<128x64xf32>
    %7 = arith.maximumf %5, %6 : vector<128x64xf32>
    %8 = arith.truncf %7 : vector<128x64xf32> to vector<128x64xbf16>
    %c0_6 = arith.constant 0 : index
    %c0_7 = arith.constant 0 : index
    %9 = vector.load %arg4[%c0_6, %c0_7] : memref<64x128xbf16, #tpu.memory_space<vmem>>, vector<64x128xbf16>
    %cst_8 = arith.constant dense<0.000000e+00> : vector<128x128xf32>
    %10 = tpu.matmul %8, %9, %cst_8 {dimension_numbers = #tpu.dot_dimension_numbers<[1], [0], [0], [1], [0, 0, 1, 1], [], []>} : vector<128x64xbf16>, vector<64x128xbf16>, vector<128x128xf32> -> vector<128x128xf32>
    %c0_9 = arith.constant 0 : index
    %c0_10 = arith.constant 0 : index
    %11 = vector.load %arg5[%c0_9, %c0_10] : memref<1x128xf32, #tpu.memory_space<vmem>>, vector<1x128xf32>
    %12 = vector.broadcast %11 : vector<1x128xf32> to vector<128x128xf32>
    %13 = arith.addf %10, %12 : vector<128x128xf32>
    %cst_11 = arith.constant 0.000000e+00 : f32
    %14 = vector.broadcast %cst_11 : f32 to vector<128x128xf32>
    %15 = arith.maximumf %13, %14 : vector<128x128xf32>
    %16 = arith.truncf %15 : vector<128x128xf32> to vector<128x128xbf16>
    %c0_12 = arith.constant 0 : index
    %c0_13 = arith.constant 0 : index
    %17 = vector.load %arg6[%c0_12, %c0_13] : memref<128x128xbf16, #tpu.memory_space<vmem>>, vector<128x128xbf16>
    %cst_14 = arith.constant dense<0.000000e+00> : vector<128x128xf32>
    %18 = tpu.matmul %16, %17, %cst_14 {dimension_numbers = #tpu.dot_dimension_numbers<[1], [0], [0], [1], [0, 0, 1, 1], [], []>} : vector<128x128xbf16>, vector<128x128xbf16>, vector<128x128xf32> -> vector<128x128xf32>
    %c0_15 = arith.constant 0 : index
    %c0_16 = arith.constant 0 : index
    %19 = vector.load %arg7[%c0_15, %c0_16] : memref<1x128xf32, #tpu.memory_space<vmem>>, vector<1x128xf32>
    %20 = vector.broadcast %19 : vector<1x128xf32> to vector<128x128xf32>
    %21 = arith.addf %18, %20 : vector<128x128xf32>
    %cst_17 = arith.constant 0.000000e+00 : f32
    %22 = vector.broadcast %cst_17 : f32 to vector<128x128xf32>
    %23 = arith.maximumf %21, %22 : vector<128x128xf32>
    %c0_18 = arith.constant 0 : index
    %c0_19 = arith.constant 0 : index
    %24 = vector.load %arg8[%c0_18, %c0_19] : memref<128x128xf32, #tpu.memory_space<vmem>>, vector<128x128xf32>
    tpu.vector_store %arg8[%c0_18, %c0_19], %23 {strides = array<i32>} : memref<128x128xf32, #tpu.memory_space<vmem>>, vector<128x128xf32>,
    return
  }
  func.func @transform_0(%arg0: i32) -> (i32, i32) {
    %c0_i32 = arith.constant 0 : i32
    %c0_i32_0 = arith.constant 0 : i32
    return %arg0, %c0_i32 : i32, i32
  }
  func.func @transform_1(%arg0: i32) -> (i32, i32) {
    %c0_i32 = arith.constant 0 : i32
    %c0_i32_0 = arith.constant 0 : i32
    %c0_i32_1 = arith.constant 0 : i32
    return %c0_i32, %c0_i32_0 : i32, i32
  }
  func.func @transform_2(%arg0: i32) -> (i32, i32) {
    %c0_i32 = arith.constant 0 : i32
    %c0_i32_0 = arith.constant 0 : i32
    %c0_i32_1 = arith.constant 0 : i32
    return %c0_i32, %c0_i32_0 : i32, i32
  }
  func.func @transform_3(%arg0: i32) -> (i32, i32) {
    %c0_i32 = arith.constant 0 : i32
    %c0_i32_0 = arith.constant 0 : i32
    %c0_i32_1 = arith.constant 0 : i32
    return %c0_i32, %c0_i32_0 : i32, i32
  }
  func.func @transform_4(%arg0: i32) -> (i32, i32) {
    %c0_i32 = arith.constant 0 : i32
    %c0_i32_0 = arith.constant 0 : i32
    %c0_i32_1 = arith.constant 0 : i32
    return %c0_i32, %c0_i32_0 : i32, i32
  }
  func.func @transform_5(%arg0: i32) -> (i32, i32) {
    %c0_i32 = arith.constant 0 : i32
    %c0_i32_0 = arith.constant 0 : i32
    %c0_i32_1 = arith.constant 0 : i32
    return %c0_i32, %c0_i32_0 : i32, i32
  }
  func.func @transform_6(%arg0: i32) -> (i32, i32) {
    %c0_i32 = arith.constant 0 : i32
    %c0_i32_0 = arith.constant 0 : i32
    %c0_i32_1 = arith.constant 0 : i32
    return %c0_i32, %c0_i32_0 : i32, i32
  }
  func.func @transform_7(%arg0: i32) -> (i32, i32) {
    %c0_i32 = arith.constant 0 : i32
    %c0_i32_0 = arith.constant 0 : i32
    return %arg0, %c0_i32 : i32, i32
  }
}

</mosaic_0001>

<bundles_post_ra>
// kernel: actor_critic_forward.1
= control target key start
LH: loop header
LB: loop body
LE: loop exit
PB: predicated region body
PF: predicated region fallthrough
CT: control target
= control target key end

     0   :  { %s1209_s24 = smov 0   ;;  %s1351_s0 = inlined_call_operand.vmem [shape: bf16[256,32], index: 0, kind: input, shape index: {}]   ;;  %s1352_s1 = inlined_call_operand.vmem [shape: bf16[32,64], index: 1, kind: input, shape index: {}]   ;;  %s1353_s2 = inlined_call_operand.vmem [shape: f32[1,64], index: 2, kind: input, shape index: {}]   ;;  %s1354_s3 = inlined_call_operand.vmem [shape: bf16[64,128], index: 3, kind: input, shape index: {}]   ;;  %s1355_s4 = inlined_call_operand.vmem [shape: f32[1,128], index: 4, kind: input, shape index: {}]   ;;  %s1356_s5 = inlined_call_operand.vmem [shape: bf16[128,128], index: 5, kind: input, shape index: {}]   ;;  %s1357_s6 = inlined_call_operand.vmem [shape: f32[1,128], index: 6, kind: input, shape index: {}]   ;;  %s1358_s7 = inlined_call_operand.vmem [shape: f32[256,128], index: 7, kind: output, shape index: {}]  }
   0x1 LB: > { %s949_s25 = sadd.s32 4294967295, %s1167_s24   ;;  %p953_p0 = scmp.ge.s32.totalorder %s1167_s24, 1  ;;  %s1167_s24 = sphi %s1209_s24, %s17_s24  }
   0x2   : > { %p238_p1 = scmp.lt.s32.totalorder %s1167_s24, 3 }
   0x4   : > { %p239_p2 = pnand %p953_p0, %p238_p1 }
   0x5   : > { %v1139_v0 = vld [vmem:[%s1352_s1] sm:$0xff] (!%p239_p2)   ;;  %s954_s28 = sshll.u32 (!%p239_p2), %s949_s25, 4  ;;  %v1140_v1 = vld [vmem:[%s1352_s1 + $0x8] sm:$0xff] (!%p239_p2)   ;;  %vm362_vm0 = vcmask (!%p239_p2), 261120   ;;  %v1151_v12 = vld [vmem:[%s1354_s3 + $0x10] sm:$0xff] (!%p239_p2)   ;;  %vm547_vm1 = vcmask (!%p239_p2), 523264  }
   0x6   : > { %242 = sbr.rel (%p239_p2) target bundleno = 706 (0x2c2), region = 48  ;;  %p271_p3 = scmp.lt.s32.totalorder (!%p239_p2), %s954_s28, 31  ;;  %1039 = vmatprep.subr.bf16.mxu0 (!%p239_p2), %v1139_v0  ;;  %v1149_v2 = vld [vmem:[%s1354_s3] sm:$0xff] (!%p239_p2)   ;;  %v1150_v3 = vld [vmem:[%s1354_s3 + $0x8] sm:$0xff] (!%p239_p2)   ;;  %v1152_v13 = vld [vmem:[%s1354_s3 + $0x18] sm:$0xff] (!%p239_p2)  }
   0x7   : > { %1040 = vmatpush3.bf16.msra.mxu0 (!%p239_p2), %v1139_v0  ;;  %1059 = vmatprep.subr.bf16.mxu1 (!%p239_p2), %v1149_v2  ;;  %v1153_v14 = vld [vmem:[%s1356_s5] sm:$0xff] (!%p239_p2)   ;;  %v1154_v15 = vld [vmem:[%s1356_s5 + $0x8] sm:$0xff] (!%p239_p2)   ;;  %v1155_v16 = vld [vmem:[%s1356_s5 + $0x10] sm:$0xff] (!%p239_p2)  }
   0x8   : > { %1041 = vmatprep.subr.bf16.mxu0 (!%p239_p2), %v1140_v1  ;;  %1060 = vmatpush3.bf16.msra.mxu1 (!%p239_p2), %v1149_v2  ;;  %v1261_v17 = vld [vmem:[%s1356_s5 + $0x18] sm:$0xff] (!%p239_p2)   ;;  %v1267_v18 = vld [vmem:[%s1356_s5 + $0x20] sm:$0xff] (!%p239_p2)   ;;  %v1274_v19 = vld [vmem:[%s1356_s5 + $0x28] sm:$0xff] (!%p239_p2)  }
   0x9   : > { %1061 = vmatprep.subr.bf16.mxu1 (!%p239_p2), %v1150_v3  ;;  %v1282_v20 = vld [vmem:[%s1353_s2] ss:$0 sm:$0xff] (!%p239_p2) }
   0xb   : > { %1042 = vmatpush3.bf16.msra.mxu0 (!%p239_p2), %v1140_v1 }
   0xc   : > { %1062 = vmatpush3.bf16.msra.mxu1 (!%p239_p2), %v1150_v3  ;;  %1083 = vmatprep.subr.bf16.mxu0 (!%p239_p2), %v1153_v14 }
   0xd   : > { %s1360_s28 = smov (!%p271_p3, %s954_s28), 31  ;;  %1063 = vmatprep.subr.bf16.mxu1 %v1151_v12 }
   0xe   : > { %s955_s12 = sshll.u32 %s1360_s28, 2  ;;  %s957_s21 = sshll.u32 %s1360_s28, 3 }
   0xf   : > { %s274_s15 = scalar_lea.vmem %s1351_s0, %s955_s12  ;;  %s1330_s25 = scalar_lea.vmem %s1358_s7, %s957_s21 }
  0x10   : > { %v1141_v4 = vld [vmem:[%s274_s15] sm:$0xff]   ;;  %v1142_v5 = vld [vmem:[%s274_s15 + $0x8] sm:$0xff]   ;;  %v1143_v6 = vld [vmem:[%s274_s15 + $0x10] sm:$0xff]   ;;  %1064 = vmatpush3.bf16.msra.mxu1 %v1151_v12 }
  0x11   : > { %1043 = vmatprep.mubr.msk.bf16.mxu0 %vm362_vm0, %v1141_v4  ;;  %v1144_v7 = vld [vmem:[%s274_s15 + $0x18] sm:$0xff]   ;;  %v1145_v8 = vld [vmem:[%s274_s15 + $0x20] sm:$0xff]   ;;  %v1146_v9 = vld [vmem:[%s274_s15 + $0x28] sm:$0xff]   ;;  %1065 = vmatprep.subr.bf16.mxu1 %v1152_v13 }
  0x12   : > { %1044 = vmatmul.mubr.msk.bf16.vlgmr.msra.gmra.mrb[0].mxu0 %vm362_vm0, %v1142_v5  ;;  %v1147_v10 = vld [vmem:[%s274_s15 + $0x30] sm:$0xff]   ;;  %v1148_v11 = vld [vmem:[%s274_s15 + $0x38] sm:$0xff]  }
  0x13   : > { %1047 = vmatprep.mubr.msk.bf16.mxu0 %vm362_vm0, %v1143_v6  ;;  %1084 = vmatpush3.bf16.msra.mxu0 %v1153_v14 }
  0x14   : > { %1066 = vmatpush3.bf16.msra.mxu1 %v1152_v13  ;;  %1085 = vmatprep.subr.bf16.mxu0 %v1154_v15  ;;  %v1159_v13 = vld [vmem:[%s1356_s5 + $0x30] sm:$0xff]  }
  0x15   : > { %1115 = vmatprep.subr.bf16.mxu1 %v1153_v14 }
  0x17   : > { %1086 = vmatpush3.bf16.msra.mxu0 %v1154_v15 }
  0x18   : > { %1087 = vmatprep.subr.bf16.mxu0 %v1155_v16 }
  0x1a   : > { %1048 = vmatmul.mubr.msk.bf16.gmra.mrb[4].mxu0 %vm362_vm0, %v1144_v7 }
  0x1b   : > { %1051 = vmatprep.mubr.msk.bf16.mxu0 %vm362_vm0, %v1145_v8  ;;  %1088 = vmatpush3.bf16.msra.mxu0 %v1155_v16 }
  0x1c   : > { %1089 = vmatprep.subr.bf16.mxu0 %v1261_v17 }
  0x1f   : > { %1090 = vmatpush3.bf16.msra.mxu0 %v1261_v17 }
  0x20   : > { %1091 = vmatprep.subr.bf16.mxu0 %v1267_v18 }
  0x22   : > { %1052 = vmatmul.mubr.msk.bf16.gmra.mrb[8].mxu0 %vm362_vm0, %v1146_v9 }
  0x23   : > { %1055 = vmatprep.mubr.msk.bf16.mxu0 %vm362_vm0, %v1147_v10  ;;  %1092 = vmatpush3.bf16.msra.mxu0 %v1267_v18 }
  0x24   : > { %1093 = vmatprep.subr.bf16.mxu0 %v1274_v19 }
  0x27   : > { %1094 = vmatpush3.bf16.msra.mxu0 %v1274_v19 }
  0x28   : > { %1095 = vmatprep.subr.bf16.mxu0 %v1159_v13 }
  0x2a   : > { %1056 = vmatmul.mubr.msk.bf16.gmra.mrb[12].mxu0 %vm362_vm0, %v1148_v11 }
  0x2b   : > { %1096 = vmatpush3.bf16.msra.mxu0 %v1159_v13 }
  0xe5   : > { %v1045_v21 = vpop.f32.mrb[0].mxu0 }
  0xe6   : > { %v430_v22 = vadd.f32 %v1045_v21, %v1282_v20  ;;  %v421_v23 = vpop.f32.mrb[1].mxu0 }
  0xe7   : > { %v422_v24 = vadd.f32 %v1282_v20, %v421_v23  ;;  %v1046_v25 = vpop.f32.mrb[2].mxu0 }
  0xe8   : > { %v433_v26 = vadd.f32 %v1046_v25, %v1282_v20  ;;  %v424_v27 = vpop.f32.mrb[3].mxu0  ;;  %v486_v29 = vmax.f32 %v430_v22, 0.0 }
  0xe9   : > { %v425_v28 = vadd.f32 %v1282_v20, %v424_v27  ;;  %v484_v31 = vmax.f32 %v422_v24, 0.0 }
  0xea   : > { %v487_v30 = vmax.f32 %v433_v26, 0.0 }
  0xeb   : > { %v485_v32 = vmax.f32 %v425_v28, 0.0 }
  0xec   : > { %v501_v33 = vpack.c.bf16 %v487_v30, %v486_v29 }
  0xed   : > { %v1049_v34 = vpop.f32.mrb[4].mxu0  ;;  %v500_v35 = vpack.c.bf16 %v485_v32, %v484_v31 }
  0xee   : > { %v446_v36 = vadd.f32 %v1049_v34, %v1282_v20  ;;  %v437_v37 = vpop.f32.mrb[5].mxu0 }
  0xef   : > { %v438_v38 = vadd.f32 %v1282_v20, %v437_v37  ;;  %v1050_v39 = vpop.f32.mrb[6].mxu0  ;;  %1067 = vmatprep.mubr.msk.bf16.mxu1 %vm547_vm1, %v500_v35 }
  0xf0   : > { %v449_v40 = vadd.f32 %v1050_v39, %v1282_v20  ;;  %v440_v41 = vpop.f32.mrb[7].mxu0  ;;  %1068 = vmatmul.mubr.msk.bf16.vlgmr.msra.gmra.mrb[0].mxu1 %vm547_vm1, %v501_v33  ;;  %v490_v43 = vmax.f32 %v446_v36, 0.0 }
  0xf1   : > { %v441_v42 = vadd.f32 %v1282_v20, %v440_v41  ;;  %1123 = vmatpush3.bf16.msra.mxu1 %v1153_v14  ;;  %v488_v45 = vmax.f32 %v438_v38, 0.0  ;;  %v1160_v14 = vld [vmem:[%s1356_s5 + $0x38] sm:$0xff]  }
  0xf2   : > { %v491_v44 = vmax.f32 %v449_v40, 0.0  ;;  %1116 = vmatprep.subr.bf16.mxu1 %v1154_v15  ;;  %1097 = vmatprep.subr.bf16.mxu0 %v1160_v14 }
  0xf3   : > { %v489_v46 = vmax.f32 %v441_v42, 0.0  ;;  %1098 = vmatpush3.bf16.msra.mxu0 %v1160_v14 }
  0xf4   : > { %v503_v47 = vpack.c.bf16 %v491_v44, %v490_v43 }
  0xf5   : > { %v502_v48 = vpack.c.bf16 %v489_v46, %v488_v45  ;;  %v1053_v49 = vpop.f32.mrb[8].mxu0  ;;  %1124 = vmatpush3.bf16.msra.mxu1 %v1154_v15  ;;  %v977_v15 = vld [vmem:[%s1355_s4] ss:$0 sm:$0xff] }
  0xf6   : > { %v462_v50 = vadd.f32 %v1053_v49, %v1282_v20  ;;  %v453_v51 = vpop.f32.mrb[9].mxu0  ;;  %1117 = vmatprep.subr.bf16.mxu1 %v1155_v16 }
  0xf7   : > { %v454_v52 = vadd.f32 %v1282_v20, %v453_v51  ;;  %v1054_v53 = vpop.f32.mrb[10].mxu0  ;;  %1071 = vmatprep.mubr.msk.bf16.mxu1 %vm547_vm1, %v502_v48 }
  0xf8   : > { %v465_v54 = vadd.f32 %v1054_v53, %v1282_v20  ;;  %v456_v55 = vpop.f32.mrb[11].mxu0  ;;  %1072 = vmatmul.mubr.msk.bf16.gmra.mrb[4].mxu1 %vm547_vm1, %v503_v47  ;;  %v494_v57 = vmax.f32 %v462_v50, 0.0 }
  0xf9   : > { %v457_v56 = vadd.f32 %v1282_v20, %v456_v55  ;;  %1125 = vmatpush3.bf16.msra.mxu1 %v1155_v16  ;;  %v492_v59 = vmax.f32 %v454_v52, 0.0 }
  0xfa   : > { %v495_v58 = vmax.f32 %v465_v54, 0.0  ;;  %1118 = vmatprep.subr.bf16.mxu1 %v1261_v17 }
  0xfb   : > { %v493_v60 = vmax.f32 %v457_v56, 0.0 }
  0xfc   : > { %v505_v61 = vpack.c.bf16 %v495_v58, %v494_v57 }
  0xfd   : > { %v504_v62 = vpack.c.bf16 %v493_v60, %v492_v59  ;;  %v1057_v63 = vpop.f32.mrb[12].mxu0  ;;  %1126 = vmatpush3.bf16.msra.mxu1 %v1261_v17 }
  0xfe   : > { %v478_v0 = vadd.f32 %v1057_v63, %v1282_v20  ;;  %v469_v1 = vpop.f32.mrb[13].mxu0  ;;  %1119 = vmatprep.subr.bf16.mxu1 %v1267_v18 }
  0xff   : > { %v470_v2 = vadd.f32 %v1282_v20, %v469_v1  ;;  %v1058_v3 = vpop.f32.mrb[14].mxu0  ;;  %1075 = vmatprep.mubr.msk.bf16.mxu1 %vm547_vm1, %v504_v62 }
 0x100   : > { %v481_v4 = vadd.f32 %v1058_v3, %v1282_v20  ;;  %v472_v5 = vpop.f32.mrb[15].mxu0  ;;  %1076 = vmatmul.mubr.msk.bf16.gmra.mrb[8].mxu1 %vm547_vm1, %v505_v61  ;;  %v498_v7 = vmax.f32 %v478_v0, 0.0 }
 0x101   : > { %v473_v6 = vadd.f32 %v1282_v20, %v472_v5  ;;  %1127 = vmatpush3.bf16.msra.mxu1 %v1267_v18  ;;  %v496_v9 = vmax.f32 %v470_v2, 0.0 }
 0x102   : > { %v499_v8 = vmax.f32 %v481_v4, 0.0  ;;  %1120 = vmatprep.subr.bf16.mxu1 %v1274_v19 }
 0x103   : > { %v497_v10 = vmax.f32 %v473_v6, 0.0 }
 0x104   : > { %v507_v11 = vpack.c.bf16 %v499_v8, %v498_v7  ;;  %v990_v8 = vld [vmem:[%s1357_s6] ss:$0 sm:$0xff] }
 0x105   : > { %v506_v12 = vpack.c.bf16 %v497_v10, %v496_v9  ;;  %1128 = vmatpush3.bf16.msra.mxu1 %v1274_v19 }
 0x106   : > { %1121 = vmatprep.subr.bf16.mxu1 %v1159_v13 }
 0x107   : > { %1079 = vmatprep.mubr.msk.bf16.mxu1 %vm547_vm1, %v506_v12 }
 0x108   : > { %1080 = vmatmul.mubr.msk.bf16.gmra.mrb[12].mxu1 %vm547_vm1, %v507_v11 }
 0x109   : > { %1129 = vmatpush3.bf16.msra.mxu1 %v1159_v13 }
 0x10a   : > { %1122 = vmatprep.subr.bf16.mxu1 %v1160_v14 }
 0x10d   : > { %1130 = vmatpush3.bf16.msra.mxu1 %v1160_v14 }
 0x1c3   : > { %v1069_v16 = vpop.f32.mrb[0].mxu1 }
 0x1c4   : > { %v615_v17 = vadd.f32 %v1069_v16, %v977_v15  ;;  %v606_v18 = vpop.f32.mrb[1].mxu1 }
 0x1c5   : > { %v607_v19 = vadd.f32 %v977_v15, %v606_v18  ;;  %v1070_v20 = vpop.f32.mrb[2].mxu1 }
 0x1c6   : > { %v618_v21 = vadd.f32 %v1070_v20, %v977_v15  ;;  %v609_v22 = vpop.f32.mrb[3].mxu1  ;;  %v671_v24 = vmax.f32 %v615_v17, 0.0 }
 0x1c7   : > { %v610_v23 = vadd.f32 %v977_v15, %v609_v22  ;;  %v669_v26 = vmax.f32 %v607_v19, 0.0 }
 0x1c8   : > { %v672_v25 = vmax.f32 %v618_v21, 0.0 }
 0x1c9   : > { %v670_v27 = vmax.f32 %v610_v23, 0.0 }
 0x1ca   : > { %v686_v28 = vpack.c.bf16 %v672_v25, %v671_v24 }
 0x1cb   : > { %v685_v29 = vpack.c.bf16 %v670_v27, %v669_v26  ;;  %v1073_v30 = vpop.f32.mrb[4].mxu1 }
 0x1cc   : > { %v631_v31 = vadd.f32 %v1073_v30, %v977_v15  ;;  %v622_v32 = vpop.f32.mrb[5].mxu1 }
 0x1cd   : > { %v623_v33 = vadd.f32 %v977_v15, %v622_v32  ;;  %v1074_v34 = vpop.f32.mrb[6].mxu1  ;;  %1099 = vmatprep.mubr.bf16.mxu0 %v685_v29 }
 0x1ce   : > { %v634_v35 = vadd.f32 %v1074_v34, %v977_v15  ;;  %v625_v36 = vpop.f32.mrb[7].mxu1  ;;  %1100 = vmatmul.mubr.bf16.vlgmr.msra.gmra.mrb[16].mxu0 %v686_v28  ;;  %v675_v38 = vmax.f32 %v631_v31, 0.0 }
 0x1cf   : > { %v626_v37 = vadd.f32 %v977_v15, %v625_v36  ;;  %v673_v40 = vmax.f32 %v623_v33, 0.0 }
 0x1d0   : > { %v676_v39 = vmax.f32 %v634_v35, 0.0 }
 0x1d1   : > { %v674_v41 = vmax.f32 %v626_v37, 0.0 }
 0x1d2   : > { %v688_v42 = vpack.c.bf16 %v676_v39, %v675_v38 }
 0x1d3   : > { %v687_v43 = vpack.c.bf16 %v674_v41, %v673_v40  ;;  %v1077_v44 = vpop.f32.mrb[8].mxu1 }
 0x1d4   : > { %v647_v45 = vadd.f32 %v1077_v44, %v977_v15  ;;  %v638_v46 = vpop.f32.mrb[9].mxu1 }
 0x1d5   : > { %v639_v47 = vadd.f32 %v977_v15, %v638_v46  ;;  %v1078_v48 = vpop.f32.mrb[10].mxu1  ;;  %1103 = vmatprep.mubr.bf16.mxu0 %v687_v43 }
 0x1d6   : > { %v650_v49 = vadd.f32 %v1078_v48, %v977_v15  ;;  %v641_v50 = vpop.f32.mrb[11].mxu1  ;;  %1104 = vmatmul.mubr.bf16.gmra.mrb[20].mxu0 %v688_v42  ;;  %v679_v52 = vmax.f32 %v647_v45, 0.0 }
 0x1d7   : > { %v642_v51 = vadd.f32 %v977_v15, %v641_v50  ;;  %v677_v54 = vmax.f32 %v639_v47, 0.0 }
 0x1d8   : > { %v680_v53 = vmax.f32 %v650_v49, 0.0 }
 0x1d9   : > { %v678_v55 = vmax.f32 %v642_v51, 0.0 }
 0x1da   : > { %v690_v56 = vpack.c.bf16 %v680_v53, %v679_v52 }
 0x1db   : > { %v689_v57 = vpack.c.bf16 %v678_v55, %v677_v54  ;;  %v1081_v58 = vpop.f32.mrb[12].mxu1 }
 0x1dc   : > { %v663_v59 = vadd.f32 %v1081_v58, %v977_v15  ;;  %v654_v60 = vpop.f32.mrb[13].mxu1 }
 0x1dd   : > { %v655_v61 = vadd.f32 %v977_v15, %v654_v60  ;;  %v1082_v62 = vpop.f32.mrb[14].mxu1  ;;  %1107 = vmatprep.mubr.bf16.mxu0 %v689_v57 }
 0x1de   : > { %v666_v63 = vadd.f32 %v1082_v62, %v977_v15  ;;  %v657_v0 = vpop.f32.mrb[15].mxu1  ;;  %1108 = vmatmul.mubr.bf16.gmra.mrb[24].mxu0 %v690_v56  ;;  %v683_v2 = vmax.f32 %v663_v59, 0.0 }
 0x1df   : > { %v658_v1 = vadd.f32 %v977_v15, %v657_v0  ;;  %v681_v4 = vmax.f32 %v655_v61, 0.0 }
 0x1e0   : > { %v684_v3 = vmax.f32 %v666_v63, 0.0 }
 0x1e1   : > { %v682_v5 = vmax.f32 %v658_v1, 0.0 }
 0x1e2   : > { %v692_v6 = vpack.c.bf16 %v684_v3, %v683_v2 }
 0x1e3   : > { %v691_v7 = vpack.c.bf16 %v682_v5, %v681_v4 }
 0x1e5   : > { %1111 = vmatprep.mubr.bf16.mxu1 %v691_v7 }
 0x1e6   : > { %1112 = vmatmul.mubr.bf16.vlgmr.msra.gmra.mrb[16].mxu1 %v692_v6 }
 0x2a1   : > { %v1101_v9 = vpop.f32.mrb[16].mxu0 }
 0x2a2   : > { %v807_v10 = vadd.f32 %v1101_v9, %v990_v8  ;;  %v798_v11 = vpop.f32.mrb[17].mxu0 }
 0x2a3   : > { %v799_v12 = vadd.f32 %v990_v8, %v798_v11  ;;  %v1102_v13 = vpop.f32.mrb[18].mxu0 }
 0x2a4   : > { %v863_v14 = vmax.f32 %v807_v10, 0.0  ;;  %v810_v15 = vadd.f32 %v1102_v13, %v990_v8  ;;  %v801_v16 = vpop.f32.mrb[19].mxu0 }
 0x2a5   : > { %v861_v17 = vmax.f32 %v799_v12, 0.0  ;;  %v802_v18 = vadd.f32 %v990_v8, %v801_v16 }
 0x2a6   : > { %879 = vst [vmem:[%s1330_s25 + $0x10] sm:$0xff] %v863_v14  ;;  %v864_v19 = vmax.f32 %v810_v15, 0.0 }
 0x2a7   : > { %877 = vst [vmem:[%s1330_s25] sm:$0xff] %v861_v17  ;;  %v862_v20 = vmax.f32 %v802_v18, 0.0 }
 0x2a8   : > { %880 = vst [vmem:[%s1330_s25 + $0x18] sm:$0xff] %v864_v19 }
 0x2a9   : > { %878 = vst [vmem:[%s1330_s25 + $0x8] sm:$0xff] %v862_v20  ;;  %v1105_v21 = vpop.f32.mrb[20].mxu0 }
 0x2aa   : > { %v823_v22 = vadd.f32 %v1105_v21, %v990_v8  ;;  %v814_v23 = vpop.f32.mrb[21].mxu0 }
 0x2ab   : > { %v815_v24 = vadd.f32 %v990_v8, %v814_v23  ;;  %v1106_v25 = vpop.f32.mrb[22].mxu0 }
 0x2ac   : > { %v867_v26 = vmax.f32 %v823_v22, 0.0  ;;  %v826_v27 = vadd.f32 %v1106_v25, %v990_v8  ;;  %v817_v28 = vpop.f32.mrb[23].mxu0 }
 0x2ad   : > { %v865_v29 = vmax.f32 %v815_v24, 0.0  ;;  %v818_v30 = vadd.f32 %v990_v8, %v817_v28 }
 0x2ae   : > { %883 = vst [vmem:[%s1330_s25 + $0x30] sm:$0xff] %v867_v26  ;;  %v868_v31 = vmax.f32 %v826_v27, 0.0 }
 0x2af   : > { %881 = vst [vmem:[%s1330_s25 + $0x20] sm:$0xff] %v865_v29  ;;  %v866_v32 = vmax.f32 %v818_v30, 0.0 }
 0x2b0   : > { %884 = vst [vmem:[%s1330_s25 + $0x38] sm:$0xff] %v868_v31 }
 0x2b1   : > { %882 = vst [vmem:[%s1330_s25 + $0x28] sm:$0xff] %v866_v32  ;;  %v1109_v33 = vpop.f32.mrb[24].mxu0 }
 0x2b2   : > { %v839_v34 = vadd.f32 %v1109_v33, %v990_v8  ;;  %v830_v35 = vpop.f32.mrb[25].mxu0 }
 0x2b3   : > { %v831_v36 = vadd.f32 %v990_v8, %v830_v35  ;;  %v1110_v37 = vpop.f32.mrb[26].mxu0 }
 0x2b4   : > { %v871_v38 = vmax.f32 %v839_v34, 0.0  ;;  %v842_v39 = vadd.f32 %v1110_v37, %v990_v8  ;;  %v833_v40 = vpop.f32.mrb[27].mxu0 }
 0x2b5   : > { %v869_v41 = vmax.f32 %v831_v36, 0.0  ;;  %v834_v42 = vadd.f32 %v990_v8, %v833_v40 }
 0x2b6   : > { %887 = vst [vmem:[%s1330_s25 + $0x50] sm:$0xff] %v871_v38  ;;  %v872_v43 = vmax.f32 %v842_v39, 0.0 }
 0x2b7   : > { %885 = vst [vmem:[%s1330_s25 + $0x40] sm:$0xff] %v869_v41  ;;  %v870_v44 = vmax.f32 %v834_v42, 0.0 }
 0x2b8   : > { %888 = vst [vmem:[%s1330_s25 + $0x58] sm:$0xff] %v872_v43 }
 0x2b9   : > { %886 = vst [vmem:[%s1330_s25 + $0x48] sm:$0xff] %v870_v44  ;;  %v1113_v45 = vpop.f32.mrb[16].mxu1 }
 0x2ba   : > { %v855_v46 = vadd.f32 %v1113_v45, %v990_v8  ;;  %v846_v47 = vpop.f32.mrb[17].mxu1 }
 0x2bb   : > { %v847_v48 = vadd.f32 %v990_v8, %v846_v47  ;;  %v1114_v49 = vpop.f32.mrb[18].mxu1 }
 0x2bc   : > { %v875_v50 = vmax.f32 %v855_v46, 0.0  ;;  %v858_v51 = vadd.f32 %v1114_v49, %v990_v8  ;;  %v849_v52 = vpop.f32.mrb[19].mxu1 }
 0x2bd   : > { %v873_v53 = vmax.f32 %v847_v48, 0.0  ;;  %v850_v54 = vadd.f32 %v990_v8, %v849_v52 }
 0x2be   : > { %891 = vst [vmem:[%s1330_s25 + $0x70] sm:$0xff] %v875_v50  ;;  %v876_v55 = vmax.f32 %v858_v51, 0.0 }
 0x2bf   : > { %889 = vst [vmem:[%s1330_s25 + $0x60] sm:$0xff] %v873_v53  ;;  %v874_v56 = vmax.f32 %v850_v54, 0.0 }
 0x2c0   : > { %892 = vst [vmem:[%s1330_s25 + $0x78] sm:$0xff] %v876_v55 }
 0x2c1   : > { %890 = vst [vmem:[%s1330_s25 + $0x68] sm:$0xff] %v874_v56 }
 0x2c2 PF: > { %s17_s24 = sadd.s32 1, %s1167_s24  }
 0x2c3   : > { %p14_p4 = scmp.ge.s32.totalorder %s17_s24, 4  }
 0x2c5   :  { %16 = sbr.rel (!%p14_p4) target bundleno = 1 (0x1), region = 78 }

</bundles_post_ra>
